<compile_context>
chip_gen: v7x
topology: tpu7x:2x2x1
jax: 0.10.0
libtpu: 0.0.40
codegen_flags: <defaults>
</compile_context>

<pallas_src>
import math

import jax
import jax.numpy as jnp
from jax.experimental import pallas as pl
from jax.experimental.pallas import tpu as pltpu


_INV_SQRT2 = 1.0 / math.sqrt(2.0)
_MIB = 1024 * 1024


def _round_up(v, m):
    return (v + m - 1) // m * m


def _vmem_capacity_bytes():
    try:
        return int(pltpu.get_tpu_info().vmem_capacity_bytes)
    except Exception:
        return 64 * _MIB  # conservative fallback (v7x per-TC VMEM)


def _ffn_kernel(x_ref, w1_ref, b1_ref, w2_ref, b2_ref, o_ref):
    # x_ref  : (tm, Dp)  input dtype -- constant block index across the H axis
    # w1_ref : (Dp, th)  bf16  (k-th contiguous block of W1)
    # b1_ref : (1,  th)  f32
    # w2_ref : (th, Dp)  bf16  (k-th contiguous block of W2)
    # b2_ref : (1,  Dp)  f32
    # o_ref  : (tm, Dp)  f32   VMEM-resident accumulator (constant block index
    #                          along the reduction axis), written back once.
    k = pl.program_id(1)

    @pl.when(k == 0)
    def _():
        o_ref[...] = jnp.zeros_like(o_ref)

    # First linear, partial over the hidden dim: bf16 x bf16 -> f32 on the MXU.
    h = jnp.dot(
        x_ref[...].astype(jnp.bfloat16),
        w1_ref[...],
        preferred_element_type=jnp.float32,
    )
    h = h + b1_ref[...]

    # Exact (erf-based) GELU in f32 — matches torch.nn.GELU() default.
    h = 0.5 * h * (1.0 + jax.lax.erf(h * _INV_SQRT2))

    # Second linear partial sum, accumulated in the f32 output tile.
    o_ref[...] += jnp.dot(
        h.astype(jnp.bfloat16), w2_ref[...], preferred_element_type=jnp.float32
    )

    @pl.when(k == pl.num_programs(1) - 1)
    def _():
        # Output-projection bias; dropout in eval mode is identity.
        o_ref[...] += b2_ref[...]


def pack_params(w1, b1, w2, b2, *, th=None):
    """One-time weight prep: bf16 cast, lane padding, contiguous k-blocking.

    w1: (D, H), b1: (1, H), w2: (H, D), b2: (1, D) — already transposed for
    the x @ W layout.  Returns a dict consumed by feed_forward().
    """
    D, H = w1.shape
    Dp = _round_up(D, 128)
    if th is None:
        th = 1024 if _vmem_capacity_bytes() >= 128 * _MIB else 512
    th = min(th, _round_up(H, 128))
    Hp = _round_up(H, th)
    kh = Hp // th

    w1p = w1.astype(jnp.bfloat16)
    w2p = w2.astype(jnp.bfloat16)
    if (Dp, Hp) != (D, H):
        w1p = jnp.pad(w1p, ((0, Dp - D), (0, Hp - H)))
        w2p = jnp.pad(w2p, ((0, Hp - H), (0, Dp - D)))
    # Pre-block so every hidden-dim tile is one contiguous DMA.
    w1p = w1p.reshape(Dp, kh, th).transpose(1, 0, 2)  # (kh, Dp, th)
    w2p = w2p.reshape(kh, th, Dp)                     # (kh, th, Dp)

    b1p = b1.reshape(1, -1).astype(jnp.float32)
    b2p = b2.reshape(1, -1).astype(jnp.float32)
    if Hp != H:
        b1p = jnp.pad(b1p, ((0, 0), (0, Hp - H)))
    if Dp != D:
        b2p = jnp.pad(b2p, ((0, 0), (0, Dp - D)))

    return {"w1": w1p, "b1": b1p, "w2": w2p, "b2": b2p, "d": D, "h": H}


def _tile_footprint_bytes(tm, th, Dp, x_itemsize):
    return (
        2 * tm * Dp * x_itemsize   # x double buffer (input dtype)
        + 2 * Dp * th * 2          # W1 double buffer (bf16)
        + 2 * th * Dp * 2          # W2 double buffer (bf16)
        + 2 * tm * Dp * 4          # f32 output-accumulator double buffer
        + 2 * (th + Dp) * 4        # biases
    )


def feed_forward(x, params, *, tm=None):
    """Position-wise FFN: dropout(gelu(x @ W1 + b1) @ W2 + b2), eval mode.

    x: (B, T, D).  params: output of pack_params().  Returns (B, T, D) in
    x.dtype.
    """
    orig_dtype = x.dtype
    B, T, D = x.shape
    assert D == params["d"], "input feature dim does not match packed params"
    w1p, b1p, w2p, b2p = params["w1"], params["b1"], params["w2"], params["b2"]
    kh, Dp, th = w1p.shape
    Hp = kh * th
    M = B * T
    x_itemsize = jnp.dtype(x.dtype).itemsize

    cap = _vmem_capacity_bytes()
    budget = cap - 16 * _MIB      # combined tile budget, compiler headroom
    vmem_limit = cap - 8 * _MIB   # never hand the whole physical VMEM to Mosaic

    # --- Row tile: as large as the roofline wants and VMEM allows. ----------
    if tm is None:
        tm = 768 if cap >= 128 * _MIB else 384
    tm = max(16, min(tm, _round_up(M, 16)))
    # Keep >= 2 row blocks so the "parallel" axis can shard across v7x's TCs.
    if M >= 32 and _round_up(M, tm) // tm < 2:
        tm = _round_up((M + 1) // 2, 16)
    while tm > 16 and _tile_footprint_bytes(tm, th, Dp, x_itemsize) > budget:
        tm = max(16, _round_up(tm // 2, 16))
    Mp = _round_up(M, tm)

    # --- Flatten / pad activations (skip pads of width zero). ---------------
    x2d = x.reshape(M, D)
    if (Mp, Dp) != (M, D):
        x2d = jnp.pad(x2d, ((0, Mp - M), (0, Dp - D)))

    grid = (Mp // tm, kh)

    cost = pl.CostEstimate(
        flops=2 * 2 * Mp * Hp * Dp,
        transcendentals=Mp * Hp,
        bytes_accessed=(
            Mp * Dp * x_itemsize                       # x read (resident per row tile)
            + (Mp // tm) * (2 * Dp * Hp * 2 + Hp * 4)  # W1+W2+b1 re-streamed per row tile
            + Dp * 4                                   # b2
            + Mp * Dp * 4                              # output write
        ),
    )

    out2d = pl.pallas_call(
        _ffn_kernel,
        out_shape=jax.ShapeDtypeStruct((Mp, Dp), jnp.float32),
        grid_spec=pltpu.PrefetchScalarGridSpec(
            num_scalar_prefetch=0,
            grid=grid,
            in_specs=[
                # x tile: constant block index across the H axis -> resident.
                pl.BlockSpec((tm, Dp), lambda i, k: (i, 0)),
                # Pre-blocked weights: contiguous (Dp, th)/(th, Dp) k-tiles.
                pl.BlockSpec((None, Dp, th), lambda i, k: (k, 0, 0)),
                pl.BlockSpec((1, th), lambda i, k: (0, k)),
                pl.BlockSpec((None, th, Dp), lambda i, k: (k, 0, 0)),
                pl.BlockSpec((1, Dp), lambda i, k: (0, 0)),
            ],
            out_specs=pl.BlockSpec((tm, Dp), lambda i, k: (i, 0)),
        ),
        compiler_params=pltpu.CompilerParams(
            dimension_semantics=("parallel", "arbitrary"),
            vmem_limit_bytes=int(vmem_limit),
        ),
        cost_estimate=cost,
    )(x2d, w1p, b1p, w2p, b2p)

    return out2d[:M, :D].reshape(B, T, D).astype(orig_dtype)


def init_params(key, num_input_features):
    """Deterministic init mimicking nn.Linear's default (uniform +/- 1/sqrt(fan_in))."""
    D = num_input_features
    H = 4 * D
    k1, k2, k3, k4 = jax.random.split(key, 4)
    bound1 = 1.0 / math.sqrt(D)
    bound2 = 1.0 / math.sqrt(H)
    # Stored already transposed for the x @ W layout.
    w1 = jax.random.uniform(k1, (D, H), jnp.float32, -bound1, bound1)
    b1 = jax.random.uniform(k2, (1, H), jnp.float32, -bound1, bound1)
    w2 = jax.random.uniform(k3, (H, D), jnp.float32, -bound2, bound2)
    b2 = jax.random.uniform(k4, (1, D), jnp.float32, -bound2, bound2)
    return w1, b1, w2, b2


def feed_forward_ref(x, w1, b1, w2, b2):
    """Pure-JAX reference mirroring the kernel's bf16-input / f32-accumulate matmuls."""
    h = jnp.einsum(
        "btd,dh->bth",
        x.astype(jnp.bfloat16),
        w1.astype(jnp.bfloat16),
        preferred_element_type=jnp.float32,
    ) + b1.reshape(-1)
    h = 0.5 * h * (1.0 + jax.lax.erf(h * _INV_SQRT2))
    out = jnp.einsum(
        "bth,hd->btd",
        h.astype(jnp.bfloat16),
        w2.astype(jnp.bfloat16),
        preferred_element_type=jnp.float32,
    ) + b2.reshape(-1)
    return out


if __name__ == "__main__":
    B, T, D = 2, 8, 32          # batch=2, seq=8, num_input_features=32 (H=128)
    key = jax.random.PRNGKey(0)
    kx, kp = jax.random.split(key)

    x = jax.random.normal(kx, (B, T, D), jnp.float32)
    w1, b1, w2, b2 = init_params(kp, D)
    params = pack_params(w1, b1, w2, b2)   # one-time weight prep (bf16/pad/k-block)

    out = feed_forward(x, params)
    out = jax.block_until_ready(out)

    ref = feed_forward_ref(x, w1, b1, w2, b2)
    assert out.shape == (B, T, D)
    err = float(jnp.max(jnp.abs(out - ref)))
    assert jnp.allclose(out, ref, atol=2e-3, rtol=2e-3), f"mismatch vs reference (max |err|={err})"

    print("KERNEL_OK")
</pallas_src>

<mosaic_0001>
module attributes {stable_mosaic.version = 11 : i64} {
  func.func @_ffn_kernel(%arg0: i32, %arg1: i32, %arg2: memref<16x128xf32, #tpu.memory_space<vmem>>, %arg3: memref<1x128x128xbf16, #tpu.memory_space<vmem>>, %arg4: memref<1x128xf32, #tpu.memory_space<vmem>>, %arg5: memref<1x128x128xbf16, #tpu.memory_space<vmem>>, %arg6: memref<1x128xf32, #tpu.memory_space<vmem>>, %arg7: memref<16x128xf32, #tpu.memory_space<vmem>>) attributes {dimension_semantics = [#tpu.dimension_semantics<parallel>, #tpu.dimension_semantics<arbitrary>], iteration_bounds = array<i64: 1, 1>, scalar_prefetch = 0 : i64, scratch_operands = 0 : i64, tpu.core_type = #tpu.core_type<tc>, window_params = [{transform_indices = @transform_0, window_bounds = array<i64: 16, 128>}, {transform_indices = @transform_1, window_bounds = array<i64: 1, 128, 128>}, {transform_indices = @transform_2, window_bounds = array<i64: 1, 128>}, {transform_indices = @transform_3, window_bounds = array<i64: 1, 128, 128>}, {pipeline_mode = #tpu.pipeline_mode<synchronous>, transform_indices = @transform_4, window_bounds = array<i64: 1, 128>}, {transform_indices = @transform_5, window_bounds = array<i64: 16, 128>}]} {
    %c0_i32 = arith.constant 0 : i32
    %0 = arith.cmpi eq, %arg1, %c0_i32 : i32
    %1 = arith.extui %0 : i1 to i32
    %c0_i32_0 = arith.constant 0 : i32
    %2 = arith.cmpi ne, %1, %c0_i32_0 : i32
    scf.if %2 {
      %cst_20 = arith.constant 0.000000e+00 : f32
      %29 = vector.broadcast %cst_20 : f32 to vector<16x128xf32>
      %c0_21 = arith.constant 0 : index
      %c0_22 = arith.constant 0 : index
      %30 = vector.load %arg7[%c0_21, %c0_22] : memref<16x128xf32, #tpu.memory_space<vmem>>, vector<16x128xf32>
      tpu.vector_store %arg7[%c0_21, %c0_22], %29 {strides = array<i32>} : memref<16x128xf32, #tpu.memory_space<vmem>>, vector<16x128xf32>,
    } else {
    }
    %c0 = arith.constant 0 : index
    %c0_1 = arith.constant 0 : index
    %3 = vector.load %arg2[%c0, %c0_1] : memref<16x128xf32, #tpu.memory_space<vmem>>, vector<16x128xf32>
    %4 = arith.truncf %3 : vector<16x128xf32> to vector<16x128xbf16>
    %c0_2 = arith.constant 0 : index
    %c0_3 = arith.constant 0 : index
    %c0_4 = arith.constant 0 : index
    %5 = vector.load %arg3[%c0_2, %c0_3, %c0_4] : memref<1x128x128xbf16, #tpu.memory_space<vmem>>, vector<1x128x128xbf16>
    %6 = vector.shape_cast %5 : vector<1x128x128xbf16> to vector<128x128xbf16>
    %cst = arith.constant dense<0.000000e+00> : vector<16x128xf32>
    %7 = tpu.matmul %4, %6, %cst {dimension_numbers = #tpu.dot_dimension_numbers<[1], [0], [0], [1], [0, 0, 1, 1], [], []>} : vector<16x128xbf16>, vector<128x128xbf16>, vector<16x128xf32> -> vector<16x128xf32>
    %c0_5 = arith.constant 0 : index
    %c0_6 = arith.constant 0 : index
    %8 = vector.load %arg4[%c0_5, %c0_6] : memref<1x128xf32, #tpu.memory_space<vmem>>, vector<1x128xf32>
    %9 = vector.broadcast %8 : vector<1x128xf32> to vector<16x128xf32>
    %10 = arith.addf %7, %9 : vector<16x128xf32>
    %cst_7 = arith.constant 5.000000e-01 : f32
    %11 = vector.broadcast %cst_7 : f32 to vector<16x128xf32>
    %12 = arith.mulf %11, %10 : vector<16x128xf32>
    %cst_8 = arith.constant 0.707106769 : f32
    %13 = vector.broadcast %cst_8 : f32 to vector<16x128xf32>
    %14 = arith.mulf %10, %13 : vector<16x128xf32>
    %15 = math.erf %14 : vector<16x128xf32>
    %cst_9 = arith.constant 1.000000e+00 : f32
    %16 = vector.broadcast %cst_9 : f32 to vector<16x128xf32>
    %17 = arith.addf %16, %15 : vector<16x128xf32>
    %18 = arith.mulf %12, %17 : vector<16x128xf32>
    %c0_10 = arith.constant 0 : index
    %c0_11 = arith.constant 0 : index
    %19 = vector.load %arg7[%c0_10, %c0_11] : memref<16x128xf32, #tpu.memory_space<vmem>>, vector<16x128xf32>
    %20 = arith.truncf %18 : vector<16x128xf32> to vector<16x128xbf16>
    %c0_12 = arith.constant 0 : index
    %c0_13 = arith.constant 0 : index
    %c0_14 = arith.constant 0 : index
    %21 = vector.load %arg5[%c0_12, %c0_13, %c0_14] : memref<1x128x128xbf16, #tpu.memory_space<vmem>>, vector<1x128x128xbf16>
    %22 = vector.shape_cast %21 : vector<1x128x128xbf16> to vector<128x128xbf16>
    %cst_15 = arith.constant dense<0.000000e+00> : vector<16x128xf32>
    %23 = tpu.matmul %20, %22, %cst_15 {dimension_numbers = #tpu.dot_dimension_numbers<[1], [0], [0], [1], [0, 0, 1, 1], [], []>} : vector<16x128xbf16>, vector<128x128xbf16>, vector<16x128xf32> -> vector<16x128xf32>
    %24 = arith.addf %19, %23 : vector<16x128xf32>
    %c0_16 = arith.constant 0 : index
    %c0_17 = arith.constant 0 : index
    %25 = vector.load %arg7[%c0_16, %c0_17] : memref<16x128xf32, #tpu.memory_space<vmem>>, vector<16x128xf32>
    tpu.vector_store %arg7[%c0_16, %c0_17], %24 {strides = array<i32>} : memref<16x128xf32, #tpu.memory_space<vmem>>, vector<16x128xf32>,
    %c0_i32_18 = arith.constant 0 : i32
    %26 = arith.cmpi eq, %arg1, %c0_i32_18 : i32
    %27 = arith.extui %26 : i1 to i32
    %c0_i32_19 = arith.constant 0 : i32
    %28 = arith.cmpi ne, %27, %c0_i32_19 : i32
    scf.if %28 {
      %c0_20 = arith.constant 0 : index
      %c0_21 = arith.constant 0 : index
      %29 = vector.load %arg7[%c0_20, %c0_21] : memref<16x128xf32, #tpu.memory_space<vmem>>, vector<16x128xf32>
      %c0_22 = arith.constant 0 : index
      %c0_23 = arith.constant 0 : index
      %30 = vector.load %arg6[%c0_22, %c0_23] : memref<1x128xf32, #tpu.memory_space<vmem>>, vector<1x128xf32>
      %31 = vector.broadcast %30 : vector<1x128xf32> to vector<16x128xf32>
      %32 = arith.addf %29, %31 : vector<16x128xf32>
      %c0_24 = arith.constant 0 : index
      %c0_25 = arith.constant 0 : index
      %33 = vector.load %arg7[%c0_24, %c0_25] : memref<16x128xf32, #tpu.memory_space<vmem>>, vector<16x128xf32>
      tpu.vector_store %arg7[%c0_24, %c0_25], %32 {strides = array<i32>} : memref<16x128xf32, #tpu.memory_space<vmem>>, vector<16x128xf32>,
    } else {
    }
    return
  }
  func.func @transform_0(%arg0: i32, %arg1: i32) -> (i32, i32) {
    %c0_i32 = arith.constant 0 : i32
    %c0_i32_0 = arith.constant 0 : i32
    return %arg0, %c0_i32 : i32, i32
  }
  func.func @transform_1(%arg0: i32, %arg1: i32) -> (i32, i32, i32) {
    %c0_i32 = arith.constant 0 : i32
    %c0_i32_0 = arith.constant 0 : i32
    %c0_i32_1 = arith.constant 0 : i32
    return %arg1, %c0_i32, %c0_i32_0 : i32, i32, i32
  }
  func.func @transform_2(%arg0: i32, %arg1: i32) -> (i32, i32) {
    %c0_i32 = arith.constant 0 : i32
    %c0_i32_0 = arith.constant 0 : i32
    return %c0_i32, %arg1 : i32, i32
  }
  func.func @transform_3(%arg0: i32, %arg1: i32) -> (i32, i32, i32) {
    %c0_i32 = arith.constant 0 : i32
    %c0_i32_0 = arith.constant 0 : i32
    %c0_i32_1 = arith.constant 0 : i32
    return %arg1, %c0_i32, %c0_i32_0 : i32, i32, i32
  }
  func.func @transform_4(%arg0: i32, %arg1: i32) -> (i32, i32) {
    %c0_i32 = arith.constant 0 : i32
    %c0_i32_0 = arith.constant 0 : i32
    %c0_i32_1 = arith.constant 0 : i32
    return %c0_i32, %c0_i32_0 : i32, i32
  }
  func.func @transform_5(%arg0: i32, %arg1: i32) -> (i32, i32) {
    %c0_i32 = arith.constant 0 : i32
    %c0_i32_0 = arith.constant 0 : i32
    return %arg0, %c0_i32 : i32, i32
  }
}

</mosaic_0001>

<bundles_post_ra>
// kernel: tpu_custom_call.1
= control target key start
LH: loop header
LB: loop body
LE: loop exit
PB: predicated region body
PF: predicated region fallthrough
CT: control target
= control target key end

     0   :  { %10 = vsyncpa [#allocation3], 0  ;;  %s646_s0 = inlined_call_operand.hbm [shape: f32[16,128], index: 0, kind: input, shape index: {}]   ;;  %s647_s1 = inlined_call_operand.hbm [shape: bf16[1,128,128], index: 1, kind: input, shape index: {}]   ;;  %s648_s2 = inlined_call_operand.vmem [shape: f32[1,128], index: 2, kind: input, shape index: {}]   ;;  %s649_s3 = inlined_call_operand.hbm [shape: bf16[1,128,128], index: 3, kind: input, shape index: {}]   ;;  %s650_s4 = inlined_call_operand.vmem [shape: f32[1,128], index: 4, kind: input, shape index: {}]   ;;  %s651_s5 = inlined_call_operand.hbm [shape: f32[16,128], index: 5, kind: output, shape index: {}]  }
   0x1   :  { %11 = vsyncpa [#allocation6], 0 }
   0x2   :  { %12 = vsyncpa [#allocation4], 0  ;;  %s540_s18 = smov [#allocation5]   ;;  %s446_s22 = scalar_lea.hbm %s647_s1, 1024 }
   0x3   :  { %s30_s19 = sshll.u32 %s540_s18, 4  ;;  %p447_p0 = scmp.ne.s32.totalorder %s647_s1, %s446_s22  ;;  %s31_s19 = int_to_ptr.vmem [resolvable:$true] %s30_s19 }
   0x4   :  { %p450_p1 = scmp.lt.u32.totalorder %s446_s22, %s647_s1 }
   0x6   :  { %p452_p2 = pnand %p450_p1, %p447_p0 }
   0x8   :  { %455 = shalt.err (!%p452_p2)
}
   0x9   :  { %s456_s27 = scalar_lea.vmem %s31_s19, 1024  ;;  %p461_p4 = scmp.lt.s32.totalorder %s31_s19, %s31_s19 }
   0xa   :  { %p457_p3 = scmp.ne.s32.totalorder %s31_s19, %s456_s27  ;;  %p462_p5 = scmp.lt.s32.totalorder %s456_s27, %s456_s27 }
   0xc   :  { %p463_p6 = por %p462_p5, %p461_p4 }
   0xe   :  { %p464_p7 = pnand %p463_p6, %p457_p3 }
  0x10   :  { %467 = shalt.err (!%p464_p7)
}
  0x11   :  { %s541_s28 = smov 64   ;;  %s542_s29 = smov 4  }
  0x12   :  { %36 = dma.hbm_to_vmem [thread:$0]  %s647_s1, 1024, %s31_s19, [#allocation6], %s541_s28, %s541_s28, %s542_s29  }
  0x13   :  { %s543_s7 = smov [#allocation2]   ;;  %s468_s11 = scalar_lea.hbm %s646_s0, 256 }
  0x14   :  { %s18_s8 = sshll.u32 %s543_s7, 4  ;;  %p469_p8 = scmp.ne.s32.totalorder %s646_s0, %s468_s11  ;;  %s19_s8 = int_to_ptr.vmem [resolvable:$true] %s18_s8 }
  0x15   :  { %p472_p9 = scmp.lt.u32.totalorder %s468_s11, %s646_s0 }
  0x17   :  { %p474_p10 = pnand %p472_p9, %p469_p8 }
  0x19   :  { %477 = shalt.err (!%p474_p10)
}
  0x1a   :  { %s478_s16 = scalar_lea.vmem %s19_s8, 256  ;;  %p483_p12 = scmp.lt.s32.totalorder %s19_s8, %s19_s8 }
  0x1b   :  { %p479_p11 = scmp.ne.s32.totalorder %s19_s8, %s478_s16  ;;  %p484_p13 = scmp.lt.s32.totalorder %s478_s16, %s478_s16 }
  0x1d   :  { %p485_p0 = por %p484_p13, %p483_p12 }
  0x1f   :  { %p486_p1 = pnand %p485_p0, %p479_p11 }
  0x21   :  { %489 = shalt.err (!%p486_p1)
}
  0x22   :  { %s544_s1 = smov 128   ;;  %s545_s17 = smov 8  }
  0x23   :  { %24 = dma.hbm_to_vmem [thread:$0]  %s646_s0, 256, %s19_s8, [#allocation3], %s544_s1, %s544_s1, %s545_s17  }
  0x24   :  { %s546_s20 = smov [#allocation7]   ;;  %s490_s24 = scalar_lea.hbm %s649_s3, 1024 }
  0x25   :  { %s44_s21 = sshll.u32 %s546_s20, 4  ;;  %p491_p2 = scmp.ne.s32.totalorder %s649_s3, %s490_s24  ;;  %s45_s21 = int_to_ptr.vmem [resolvable:$true] %s44_s21 }
  0x26   :  { %p494_p3 = scmp.lt.u32.totalorder %s490_s24, %s649_s3 }
  0x28   :  { %p496_p4 = pnand %p494_p3, %p491_p2 }
  0x2a   :  { %499 = shalt.err (!%p496_p4)
}
  0x2b   :  { %s500_s6 = scalar_lea.vmem %s45_s21, 1024  ;;  %p505_p6 = scmp.lt.s32.totalorder %s45_s21, %s45_s21 }
  0x2c   :  { %p501_p5 = scmp.ne.s32.totalorder %s45_s21, %s500_s6  ;;  %p506_p7 = scmp.lt.s32.totalorder %s500_s6, %s500_s6 }
  0x2e   :  { %p507_p8 = por %p506_p7, %p505_p6 }
  0x30   :  { %p508_p9 = pnand %p507_p8, %p501_p5 }
  0x32   :  { %511 = shalt.err (!%p508_p9)
}
  0x33   :  { %50 = dma.hbm_to_vmem [thread:$0]  %s649_s3, 1024, %s45_s21, [#allocation6], %s541_s28, %s541_s28, %s542_s29  }
  0x34   :  { %534 = dma.done.wait [#allocation3], 256  }
  0x35   :  { %535 = vsyncadd [#allocation3], 4294967040 }
  0x36   :  { %536 = dma.done.wait [#allocation6], 2048  }
  0x37   :  { %537 = vsyncadd [#allocation6], 4294965248  ;;  %v547_v0 = vmov 0.0   ;;  %vm548_vm0 = vmmov 0   ;;  %v426_v1 = vld [vmem:[#allocation5] sm:$0xff]   ;;  %v427_v2 = vld [vmem:[#allocation5 + $0x8] sm:$0xff]  }
  0x38   :  { %376 = vmatprep.subr.bf16.mxu0 %v547_v0  ;;  %392 = vmatprep.mubr.msk.bf16.mxu0 %vm548_vm0, %v547_v0  ;;  %v428_v3 = vld [vmem:[#allocation5 + $0x10] sm:$0xff]   ;;  %v434_v4 = vld [vmem:[#allocation7] sm:$0xff]   ;;  %v429_v5 = vld [vmem:[#allocation5 + $0x18] sm:$0xff]   ;;  %s549_s8 = smov [#allocation8]  }
  0x39   :  { %396 = vmatprep.subr.bf16.mxu1 %v547_v0  ;;  %412 = vmatprep.mubr.msk.bf16.mxu1 %vm548_vm0, %v547_v0  ;;  %v435_v6 = vld [vmem:[#allocation7 + $0x8] sm:$0xff]   ;;  %v430_v7 = vld [vmem:[#allocation5 + $0x20] sm:$0xff]   ;;  %v432_v9 = vld [vmem:[#allocation5 + $0x30] sm:$0xff]   ;;  %s327_s9 = sshll.u32 %s549_s8, 4  ;;  %s328_s9 = int_to_ptr.vmem [resolvable:$true] %s327_s9 }
  0x3a   :  { %377 = vmatpush3.bf16.msra.mxu0 %v426_v1  ;;  %397 = vmatpush3.bf16.msra.mxu1 %v434_v4  ;;  %v431_v8 = vld [vmem:[#allocation5 + $0x28] sm:$0xff]   ;;  %v433_v10 = vld [vmem:[#allocation5 + $0x38] sm:$0xff]   ;;  %v69_v11 = vld [vmem:[#allocation2] sm:$0xff]  ;;  %s512_s10 = scalar_lea.vmem %s328_s9, 256  ;;  %p517_p11 = scmp.lt.s32.totalorder %s328_s9, %s328_s9 }
  0x3b   :  { %378 = vmatprep.subr.bf16.mxu0 %v547_v0  ;;  %398 = vmatprep.subr.bf16.mxu1 %v547_v0  ;;  %v70_v12 = vld [vmem:[#allocation2 + $0x8] sm:$0xff]  ;;  %v436_v14 = vld [vmem:[#allocation7 + $0x10] sm:$0xff]   ;;  %v438_v16 = vld [vmem:[#allocation7 + $0x20] sm:$0xff]   ;;  %p513_p10 = scmp.ne.s32.totalorder %s328_s9, %s512_s10  ;;  %p518_p12 = scmp.lt.s32.totalorder %s512_s10, %s512_s10 }
  0x3c   :  { %v71_v13 = vpack.c.bf16 %v70_v12, %v69_v11  ;;  %v437_v15 = vld [vmem:[#allocation7 + $0x18] sm:$0xff]   ;;  %v439_v17 = vld [vmem:[#allocation7 + $0x28] sm:$0xff]   ;;  %v440_v18 = vld [vmem:[#allocation7 + $0x30] sm:$0xff]  }
  0x3d   :  { %v441_v19 = vld [vmem:[#allocation7 + $0x38] sm:$0xff]   ;;  %v340_v20 = vld [vmem:[%s648_s2] ss:$0 sm:$0xff]  ;;  %p519_p13 = por %p518_p12, %p517_p11 }
  0x3e   :  { %379 = vmatpush3.bf16.msra.mxu0 %v427_v2  ;;  %399 = vmatpush3.bf16.msra.mxu1 %v435_v6  ;;  %v357_v39 = vld [vmem:[%s650_s4] ss:$0 sm:$0xff] }
  0x3f   :  { %380 = vmatprep.subr.bf16.mxu0 %v547_v0  ;;  %400 = vmatprep.subr.bf16.mxu1 %v547_v0  ;;  %p520_p0 = pnand %p519_p13, %p513_p10 }
  0x42   :  { %381 = vmatpush3.bf16.msra.mxu0 %v428_v3  ;;  %401 = vmatpush3.bf16.msra.mxu1 %v436_v14 }
  0x43   :  { %382 = vmatprep.subr.bf16.mxu0 %v547_v0  ;;  %402 = vmatprep.subr.bf16.mxu1 %v547_v0 }
  0x46   :  { %383 = vmatpush3.bf16.msra.mxu0 %v429_v5  ;;  %403 = vmatpush3.bf16.msra.mxu1 %v437_v15 }
  0x47   :  { %384 = vmatprep.subr.bf16.mxu0 %v547_v0  ;;  %404 = vmatprep.subr.bf16.mxu1 %v547_v0 }
  0x4a   :  { %385 = vmatpush3.bf16.msra.mxu0 %v430_v7  ;;  %405 = vmatpush3.bf16.msra.mxu1 %v438_v16 }
  0x4b   :  { %386 = vmatprep.subr.bf16.mxu0 %v547_v0  ;;  %406 = vmatprep.subr.bf16.mxu1 %v547_v0 }
  0x4e   :  { %387 = vmatpush3.bf16.msra.mxu0 %v431_v8  ;;  %407 = vmatpush3.bf16.msra.mxu1 %v439_v17 }
  0x4f   :  { %388 = vmatprep.subr.bf16.mxu0 %v547_v0  ;;  %408 = vmatprep.subr.bf16.mxu1 %v547_v0 }
  0x52   :  { %389 = vmatpush3.bf16.msra.mxu0 %v432_v9  ;;  %409 = vmatpush3.bf16.msra.mxu1 %v440_v18 }
  0x53   :  { %390 = vmatprep.subr.bf16.mxu0 %v547_v0  ;;  %410 = vmatprep.subr.bf16.mxu1 %v547_v0 }
  0x56   :  { %391 = vmatpush3.bf16.msra.mxu0 %v433_v10  ;;  %411 = vmatpush3.bf16.msra.mxu1 %v441_v19 }
  0x59   :  { %393 = vmatmul.mubr.bf16.vlgmr.msra.gmra.mrb[0].mxu0 %v71_v13 }
 0x12c   :  { %v177_v21 = vpop.f32.mrb[0].mxu0 }
 0x12d   :  { %v178_v22 = vadd.f32 %v340_v20, %v177_v21  ;;  %v394_v23 = vpop.f32.mrb[1].mxu0 }
 0x12e   :  { %v180_v24 = vpop.f32.mrb[2].mxu0 }
 0x12f   :  { %v186_v25 = vmul.f32 0.70710677, %v178_v22  ;;  %v181_v26 = vadd.f32 %v340_v20, %v180_v24  ;;  %v395_v27 = vpop.f32.mrb[3].mxu0  ;;  %v184_v32 = vmul.f32 0.5, %v178_v22 }
 0x131   :  { %442 = verf.f32 %v186_v25  ;;  %v187_v28 = vmul.f32 0.70710677, %v181_v26  ;;  %v185_v33 = vmul.f32 0.5, %v181_v26 }
 0x133   :  { %444 = verf.f32 %v187_v28 }
 0x13b   :  { %v443_v29 = vpop.eup %442 }
 0x13c   :  { %v190_v30 = vadd.f32 1.0, %v443_v29 }
 0x13d   :  { %v445_v31 = vpop.eup %444 }
 0x13e   :  { %v191_v34 = vadd.f32 1.0, %v445_v31  ;;  %v192_v35 = vmul.f32 %v190_v30, %v184_v32 }
 0x140   :  { %v193_v36 = vmul.f32 %v191_v34, %v185_v33 }
 0x142   :  { %v196_v37 = vpack.c.bf16 %v193_v36, %v192_v35 }
 0x144   :  { %413 = vmatmul.mubr.bf16.vlgmr.msra.gmra.mrb[0].mxu1 %v196_v37 }
 0x217   :  { %v295_v38 = vpop.f32.mrb[0].mxu1 }
 0x218   :  { %v414_v40 = vpop.f32.mrb[1].mxu1  ;;  %v318_v43 = vadd.f32 %v357_v39, %v295_v38 }
 0x219   :  { %v298_v41 = vpop.f32.mrb[2].mxu1 }
 0x21a   :  { %v415_v42 = vpop.f32.mrb[3].mxu1  ;;  %v319_v44 = vadd.f32 %v357_v39, %v298_v41  ;;  %320 = vst [vmem:[#allocation8] sm:$0xff] %v318_v43 }
 0x21c   :  { %321 = vst [vmem:[#allocation8 + $0x8] sm:$0xff] %v319_v44 }
 0x21d   :  { %523 = shalt.err (!%p520_p0)
}
 0x21e   :  { %s524_s4 = scalar_lea.hbm %s651_s5, 256 }
 0x21f   :  { %p525_p1 = scmp.ne.s32.totalorder %s651_s5, %s524_s4  ;;  %p528_p2 = scmp.lt.u32.totalorder %s524_s4, %s651_s5 }
 0x221   :  { %p530_p3 = pnand %p528_p2, %p525_p1 }
 0x223   :  { %533 = shalt.err (!%p530_p3)
}
 0x224   :  { %333 = dma.vmem_to_hbm [thread:$0]  %s328_s9, 256, %s651_s5, [#allocation4], %s544_s1, %s544_s1, %s545_s17  }
 0x225   :  { %538 = dma.done.wait [#allocation4], 256  }
 0x226   :  { %539 = vsyncadd [#allocation4], 4294967040 }
 0x227   :  { %337 = vsyncpa [#allocation3], 1 }
 0x228   :  { %338 = vsyncpa [#allocation6], 1 }
 0x229   :  { %339 = vsyncpa [#allocation4], 1 }

</bundles_post_ra>
